<compile_context>
chip_gen: v5e
topology: v5e:2x2
jax: 0.10.0
libtpu: 0.0.40
codegen_flags: <defaults>
</compile_context>

<pallas_src>
import functools

import jax
import jax.numpy as jnp
from jax.experimental import pallas as pl
from jax.experimental.pallas import tpu as pltpu

# ------------------------------ small config --------------------------------
B = 2
IN_CHANNELS = 16
OUT_CHANNELS = 16
KERNEL_SIZE = (2, 3)      # (kT, kF): causal in time, transposed (up-sampling) in frequency
FSTRIDE = 2
OUTPUT_PADDING_F = 1
T = 8
F = 16


def _round_up(n, m):
    return ((n + m - 1) // m) * m


# --------------------------------- kernel -----------------------------------
def tconv_kernel(x_ref, w_ref, b_ref, o_ref):
    # One fused MXU matmul: [TM, K] @ [K, N]  (+ bias row broadcast), lane-dense store.
    acc = jnp.dot(x_ref[...], w_ref[...], preferred_element_type=jnp.float32)
    o_ref[...] = (acc + b_ref[...]).astype(o_ref.dtype)


# -------------------------------- wrapper ------------------------------------
def causal_trans_conv_block(x, weight, bias, *, fstride, output_padding_f=0):
    """PyTorch CausalTransConvBlock.forward.

    x:      [B, Cin, T, F]       (NCHW, like the torch module)
    weight: [Cin, Cout, kT, kF]  (torch ConvTranspose2d layout)
    bias:   [Cout] or None
    returns [B, Cout, T, F_out] with F_out = (F-1)*fstride + kF + output_padding_f
    """
    Bb, Cin, Tt, Ff = x.shape
    _, Cout, kT, kF = weight.shape
    F_out = (Ff - 1) * fstride + kF + output_padding_f
    if bias is None:
        bias = jnp.zeros((Cout,), x.dtype)

    # ---- causal-time im2col: tap kt reads x[t - kt] (zero for t - kt < 0) ----
    xcl = jnp.transpose(x, (0, 2, 3, 1))                              # [B, T, F, Cin]
    xpad = jnp.pad(xcl, ((0, 0), (kT - 1, 0), (0, 0), (0, 0)))        # left-pad time
    taps = [xpad[:, (kT - 1 - kt):(kT - 1 - kt) + Tt, :, :] for kt in range(kT)]
    # columns ordered (kt, f_in, c_in) to match the Toeplitz weight below
    x2 = jnp.concatenate([t.reshape(Bb * Tt, Ff * Cin) for t in taps], axis=-1)

    # ---- block-Toeplitz weight: W[(kt,f_i,ci),(f_o,co)] = w[ci,co,kt, f_o - f_i*fstride] ----
    f_i = jnp.arange(Ff)
    kf = jnp.arange(kF)
    f_o = jnp.arange(F_out)
    mask = (f_i[:, None, None] * fstride + kf[None, :, None]
            == f_o[None, None, :]).astype(weight.dtype)               # [F, kF, F_out]
    wbig = jnp.einsum('iotk,fkg->tfigo', weight, mask)                # [kT, F, Cin, F_out, Cout]
    K = kT * Ff * Cin
    N = F_out * Cout
    wbig = wbig.reshape(K, N)
    bbig = jnp.tile(bias, (F_out,)).reshape(1, N)                     # b[(f_o, co)] = bias[co]
    # TODO(synk): wbig density scales as O(F*F_out); for very large F switch to a per-kf
    # accumulation kernel instead of the dense Toeplitz matrix.

    # ---- pad reduce / column dims to multiples of 128 (aligned loads, unmasked stores) ----
    K_pad = _round_up(K, 128)
    N_pad = _round_up(N, 128)
    x2 = jnp.pad(x2, ((0, 0), (0, K_pad - K)))
    wbig = jnp.pad(wbig, ((0, K_pad - K), (0, N_pad - N)))
    bbig = jnp.pad(bbig, ((0, 0), (0, N_pad - N)))

    # ---- row tiling: pad to a multiple of 8 (tile at 128 only if rows grow large) ----
    M = Bb * Tt
    if M <= 128:
        M_pad = _round_up(M, 8)
        TM = M_pad
    else:
        M_pad = _round_up(M, 128)
        TM = 128
    x2p = jnp.pad(x2, ((0, M_pad - M), (0, 0)))

    out = pl.pallas_call(
        tconv_kernel,
        out_shape=jax.ShapeDtypeStruct((M_pad, N_pad), jnp.float32),
        grid=(M_pad // TM,),
        in_specs=[
            pl.BlockSpec((TM, K_pad), lambda i: (i, 0)),
            pl.BlockSpec((K_pad, N_pad), lambda i: (0, 0)),
            pl.BlockSpec((1, N_pad), lambda i: (0, 0)),
        ],
        out_specs=pl.BlockSpec((TM, N_pad), lambda i: (i, 0)),
        compiler_params=pltpu.CompilerParams(dimension_semantics=("arbitrary",)),
    )(x2p, wbig, bbig)

    out = out[:M, :N].reshape(Bb, Tt, F_out, Cout)
    return jnp.transpose(out, (0, 3, 1, 2))                           # -> [B, Cout, T, F_out]


# ------------------------- independent pure-JAX reference --------------------
def ref_causal_trans_conv(x, w, b, fstride, opf):
    Bb, Cin, Tt, Ff = x.shape
    _, Cout, kT, kF = w.shape
    F_out = (Ff - 1) * fstride + kF + opf
    T_full = Tt + kT - 1
    out = jnp.zeros((Bb, Cout, T_full, F_out), jnp.float32) + b[None, :, None, None]
    for kt in range(kT):
        for kf in range(kF):
            contrib = jnp.einsum('bitf,io->botf', x, w[:, :, kt, kf])
            out = out.at[:, :, kt:kt + Tt,
                         kf:kf + (Ff - 1) * fstride + 1:fstride].add(contrib)
    return out[:, :, :Tt, :]                                          # causal time crop


# ----------------------------------- main ------------------------------------
if __name__ == "__main__":
    key = jax.random.PRNGKey(0)
    kx, kw, kb = jax.random.split(key, 3)
    kT, kF = KERNEL_SIZE
    s = 1.0 / float(IN_CHANNELS * kT * kF) ** 0.5
    x = jax.random.normal(kx, (B, IN_CHANNELS, T, F), jnp.float32)
    w = jax.random.uniform(kw, (IN_CHANNELS, OUT_CHANNELS, kT, kF), jnp.float32, -s, s)
    b = jax.random.uniform(kb, (OUT_CHANNELS,), jnp.float32, -s, s)

    fwd = jax.jit(functools.partial(causal_trans_conv_block,
                                    fstride=FSTRIDE,
                                    output_padding_f=OUTPUT_PADDING_F))
    out = jax.block_until_ready(fwd(x, w, b))

    F_OUT = (F - 1) * FSTRIDE + kF + OUTPUT_PADDING_F
    ref = ref_causal_trans_conv(x, w, b, FSTRIDE, OUTPUT_PADDING_F)
    assert out.shape == (B, OUT_CHANNELS, T, F_OUT), out.shape
    assert ref.shape == out.shape
    assert bool(jnp.all(jnp.isfinite(out)))
    max_err = float(jnp.max(jnp.abs(out - ref)))
    assert max_err < 1e-4, f"mismatch vs reference: {max_err}"
    print("KERNEL_OK")
</pallas_src>

<mosaic_0001>
module attributes {stable_mosaic.version = 11 : i64} {
  func.func @tconv_kernel(%arg0: i32, %arg1: memref<16x512xf32, #tpu.memory_space<vmem>>, %arg2: memref<512x640xf32, #tpu.memory_space<vmem>>, %arg3: memref<1x640xf32, #tpu.memory_space<vmem>>, %arg4: memref<16x640xf32, #tpu.memory_space<vmem>>) attributes {dimension_semantics = [#tpu.dimension_semantics<arbitrary>], iteration_bounds = array<i64: 1>, scalar_prefetch = 0 : i64, scratch_operands = 0 : i64, tpu.core_type = #tpu.core_type<tc>, window_params = [{transform_indices = @transform_0, window_bounds = array<i64: 16, 512>}, {pipeline_mode = #tpu.pipeline_mode<synchronous>, transform_indices = @transform_1, window_bounds = array<i64: 512, 640>}, {pipeline_mode = #tpu.pipeline_mode<synchronous>, transform_indices = @transform_2, window_bounds = array<i64: 1, 640>}, {transform_indices = @transform_3, window_bounds = array<i64: 16, 640>}]} {
    %c0 = arith.constant 0 : index
    %c0_0 = arith.constant 0 : index
    %0 = vector.load %arg1[%c0, %c0_0] : memref<16x512xf32, #tpu.memory_space<vmem>>, vector<16x512xf32>
    %c0_1 = arith.constant 0 : index
    %c0_2 = arith.constant 0 : index
    %1 = vector.load %arg2[%c0_1, %c0_2] : memref<512x640xf32, #tpu.memory_space<vmem>>, vector<512x640xf32>
    %cst = arith.constant dense<0.000000e+00> : vector<16x640xf32>
    %2 = tpu.matmul %0, %1, %cst {dimension_numbers = #tpu.dot_dimension_numbers<[1], [0], [0], [1], [0, 0, 1, 1], [], []>} : vector<16x512xf32>, vector<512x640xf32>, vector<16x640xf32> -> vector<16x640xf32>
    %c0_3 = arith.constant 0 : index
    %c0_4 = arith.constant 0 : index
    %3 = vector.load %arg3[%c0_3, %c0_4] : memref<1x640xf32, #tpu.memory_space<vmem>>, vector<1x640xf32>
    %4 = vector.broadcast %3 : vector<1x640xf32> to vector<16x640xf32>
    %5 = arith.addf %2, %4 : vector<16x640xf32>
    %c0_5 = arith.constant 0 : index
    %c0_6 = arith.constant 0 : index
    %6 = vector.load %arg4[%c0_5, %c0_6] : memref<16x640xf32, #tpu.memory_space<vmem>>, vector<16x640xf32>
    tpu.vector_store %arg4[%c0_5, %c0_6], %5 {strides = array<i32>} : memref<16x640xf32, #tpu.memory_space<vmem>>, vector<16x640xf32>,
    return
  }
  func.func @transform_0(%arg0: i32) -> (i32, i32) {
    %c0_i32 = arith.constant 0 : i32
    %c0_i32_0 = arith.constant 0 : i32
    return %arg0, %c0_i32 : i32, i32
  }
  func.func @transform_1(%arg0: i32) -> (i32, i32) {
    %c0_i32 = arith.constant 0 : i32
    %c0_i32_0 = arith.constant 0 : i32
    %c0_i32_1 = arith.constant 0 : i32
    return %c0_i32, %c0_i32_0 : i32, i32
  }
  func.func @transform_2(%arg0: i32) -> (i32, i32) {
    %c0_i32 = arith.constant 0 : i32
    %c0_i32_0 = arith.constant 0 : i32
    %c0_i32_1 = arith.constant 0 : i32
    return %c0_i32, %c0_i32_0 : i32, i32
  }
  func.func @transform_3(%arg0: i32) -> (i32, i32) {
    %c0_i32 = arith.constant 0 : i32
    %c0_i32_0 = arith.constant 0 : i32
    return %arg0, %c0_i32 : i32, i32
  }
}

</mosaic_0001>

<bundles_post_ra>
// kernel: tile.8
= control target key start
LH: loop header
LB: loop body
LE: loop exit
PB: predicated region body
PF: predicated region fallthrough
CT: control target
= control target key end

     0   :  { %s46_s0 = inlined_call_operand.vmem [shape: f32[16], index: 0, kind: input, shape index: {}]   ;;  %s47_s1 = inlined_call_operand.vmem [shape: f32[34,16], index: 1, kind: output, shape index: {}]  }
   0x1   :  { %v4_v0 = vld [vmem:[%s46_s0] ss:$0 sm:$0xff] }
   0x2   :  { %5 = vst [vmem:[%s47_s1] sm:$0xff] %v4_v0 }
   0x3   :  { %14 = vst [vmem:[%s47_s1 + $0x8] sm:$0xff] %v4_v0 }
   0x4   :  { %15 = vst [vmem:[%s47_s1 + $0x10] sm:$0xff] %v4_v0 }
   0x5   :  { %16 = vst [vmem:[%s47_s1 + $0x18] sm:$0xff] %v4_v0 }
   0x6   :  { %17 = vst [vmem:[%s47_s1 + $0x20] sm:$0xff] %v4_v0 }

// kernel: tile.9
= control target key start
LH: loop header
LB: loop body
LE: loop exit
PB: predicated region body
PF: predicated region fallthrough
CT: control target
= control target key end

     0   :  { %s109_s8 = smov 112   ;;  %s110_s11 = smov 80   ;;  %vm5_vm0 = vcmask 1044484   ;;  %vm7_vm1 = vcmask 130048   ;;  %vm15_vm2 = vcmask 1048448   ;;  %vm21_vm3 = vcmask 917248   ;;  %s171_s0 = inlined_call_operand.vmem [shape: f32[34,16], index: 0, kind: input, shape index: {}]   ;;  %s172_s1 = inlined_call_operand.vmem [shape: f32[1,544], index: 1, kind: output, shape index: {}]  }
   0x1   :  { %v90_v0 = vld [vmem:[%s171_s0 + $0x7] ss:$8 sm:$0xf]   ;;  %v92_v1 = vld [vmem:[%s171_s0 + $0x5] ss:$8 sm:$0xf]  }
   0x2   :  { %13 = vrot.lane.b32.xlu0 %v90_v0, %s109_s8  ;;  %25 = vrot.lane.b32.xlu1 %v92_v1, %s110_s11  ;;  %v94_v2 = vld [vmem:[%s171_s0 + $0x3] ss:$8 sm:$0xf]   ;;  %s111_s14 = smov 48   ;;  %s112_s19 = smov 96   ;;  %vm27_vm4 = vcmask 786048  }
   0x3   :  { %37 = vrot.lane.b32.xlu2 %v94_v2, %s111_s14  ;;  %v91_v3 = vld [vmem:[%s171_s0 + $0x6] ss:$8 sm:$0xf]   ;;  %v93_v4 = vld [vmem:[%s171_s0 + $0x4] ss:$8 sm:$0xf]  }
   0x4   :  { %s113_s20 = smov 64   ;;  %v95_v5 = vld [vmem:[%s171_s0 + $0x2] ss:$8 sm:$0xf]   ;;  %v97_v7 = vld [vmem:[%s171_s0 + $0x1d] sm:$0x10]  }
   0x5   :  { %v96_v6 = vld [vmem:[%s171_s0 + $0x1] ss:$8 sm:$0xf]   ;;  %s114_s27 = smov 32   ;;  %s115_s28 = smov 16   ;;  %vm33_vm5 = vcmask 654848  }
   0x6   :  { %v52_v8 = vsel %vm5_vm0, %v97_v7, %v96_v6  ;;  %v2_v9 = vld [vmem:[%s171_s0] ss:$8 sm:$0xf]   ;;  %vm39_vm6 = vcmask 523648   ;;  %vm45_vm7 = vcmask 392448   ;;  %vm55_vm8 = vcmask 261248  }
   0x7   :  { %v89_v10 = vld [vmem:[%s171_s0 + $0x1c] sm:$0x10]  }
   0x8   :  { %v6_v11 = vsel %vm5_vm0, %v89_v10, %v2_v9 }
   0x9   :  { %8 = vst.msk [vmem:[#allocation0] ss:$8 sm:$0xf] %vm7_vm1, %v6_v11  }
   0xa   :  { %19 = vrot.lane.b32.xlu0 %v91_v3, %s112_s19  ;;  %31 = vrot.lane.b32.xlu1 %v93_v4, %s113_s20  ;;  %10 = vst.msk [vmem:[#allocation0 + $0x1c] sm:$0x10] %vm7_vm1, %v6_v11  }
   0xb   :  { %43 = vrot.lane.b32.xlu2 %v95_v5, %s114_s27 }
  0x12   :  { %53 = vrot.lane.b32.xlu0 %v52_v8, %s115_s28 }
  0x5d   :  { %v38_v12 = vpop.permute.xlu2 %37  }
  0x65   :  { %v44_v13 = vpop.permute.xlu2 %43  }
  0x74   :  { %v14_v14 = vpop.permute.xlu0 %13   ;;  %v26_v15 = vpop.permute.xlu1 %25  }
  0x75   :  { %16 = vst.msk [vmem:[#allocation0] ss:$8 sm:$0xf] %vm15_vm2, %v14_v14  }
  0x7c   :  { %v20_v16 = vpop.permute.xlu0 %19   ;;  %v32_v17 = vpop.permute.xlu1 %31  }
  0x7d   :  { %22 = vst.msk [vmem:[#allocation0] ss:$8 sm:$0xf] %vm21_vm3, %v20_v16  }
  0x7e   :  { %28 = vst.msk [vmem:[#allocation0] ss:$8 sm:$0xf] %vm27_vm4, %v26_v15  }
  0x7f   :  { %34 = vst.msk [vmem:[#allocation0] ss:$8 sm:$0xf] %vm33_vm5, %v32_v17  }
  0x80   :  { %40 = vst.msk [vmem:[#allocation0] ss:$8 sm:$0xf] %vm39_vm6, %v38_v12  }
  0x81   :  { %46 = vst.msk [vmem:[#allocation0] ss:$8 sm:$0xf] %vm45_vm7, %v44_v13  }
  0x84   :  { %v54_v18 = vpop.permute.xlu0 %53  }
  0x85   :  { %56 = vst.msk [vmem:[#allocation0] ss:$8 sm:$0xf] %vm55_vm8, %v54_v18  }
  0x86   :  { %58 = vst.msk [vmem:[#allocation0 + $0x1c] sm:$0x10] %vm55_vm8, %v54_v18  }
  0x8c   :  { %v61_v19 = vld [vmem:[#allocation0] sm:$0x1]  ;;  %v66_v20 = vld [vmem:[#allocation0 + $0x8] sm:$0x1]  ;;  %v72_v21 = vld [vmem:[#allocation0 + $0x10] sm:$0x1] }
  0x8d   :  { %64 = vst [vmem:[%s172_s1] sm:$0x1] %v61_v19  ;;  %v78_v22 = vld [vmem:[#allocation0 + $0x18] sm:$0x1]  ;;  %v84_v23 = vld [vmem:[#allocation0 + $0x20] sm:$0x1] }
  0x8e   :  { %98 = vst [vmem:[%s172_s1 + $0x1] sm:$0x1] %v66_v20 }
  0x8f   :  { %99 = vst [vmem:[%s172_s1 + $0x2] sm:$0x1] %v72_v21 }
  0x90   :  { %100 = vst [vmem:[%s172_s1 + $0x3] sm:$0x1] %v78_v22 }
  0x91   :  { %101 = vst [vmem:[%s172_s1 + $0x4] sm:$0x1] %v84_v23 }

// kernel: causal_trans_conv_block.1
= control target key start
LH: loop header
LB: loop body
LE: loop exit
PB: predicated region body
PF: predicated region fallthrough
CT: control target
= control target key end

     0   :  { %s1928_s1 = inlined_call_operand.vmem [shape: f32[512,640], index: 1, kind: input, shape index: {}]   ;;  %s1929_s0 = inlined_call_operand.vmem [shape: f32[16,512], index: 0, kind: input, shape index: {}]   ;;  %s1930_s2 = inlined_call_operand.vmem [shape: f32[1,640], index: 2, kind: input, shape index: {}]   ;;  %s1931_s3 = inlined_call_operand.vmem [shape: f32[16,640], index: 3, kind: output, shape index: {}]  }
   0x1   :  { %v257_v0 = vld [vmem:[%s1928_s1 + $0x758] sm:$0xff]  ;;  %v252_v2 = vld [vmem:[%s1928_s1 + $0x730] sm:$0xff]  ;;  %v247_v6 = vld [vmem:[%s1928_s1 + $0x708] sm:$0xff] }
   0x2   :  { %v97_v1 = vld [vmem:[%s1928_s1 + $0x258] sm:$0xff]  ;;  %400 = vmatpush.msra.mxu2 %v257_v0  ;;  %v92_v4 = vld [vmem:[%s1928_s1 + $0x230] sm:$0xff]  ;;  %v87_v8 = vld [vmem:[%s1928_s1 + $0x208] sm:$0xff] }
   0x3   :  { %354 = vmatpush.msra.mxu0 %v97_v1  ;;  %v337_v3 = vld [vmem:[%s1928_s1 + $0x9d8] sm:$0xff]  ;;  %v332_v7 = vld [vmem:[%s1928_s1 + $0x9b0] sm:$0xff]  ;;  %v327_v10 = vld [vmem:[%s1928_s1 + $0x988] sm:$0xff] }
   0x4   :  { %v177_v5 = vld [vmem:[%s1928_s1 + $0x4d8] sm:$0xff]  ;;  %423 = vmatpush.msra.mxu3 %v337_v3  ;;  %401 = vmatpush.msra.mxu2 %v252_v2  ;;  %v172_v9 = vld [vmem:[%s1928_s1 + $0x4b0] sm:$0xff]  ;;  %v242_v11 = vld [vmem:[%s1928_s1 + $0x6e0] sm:$0xff] }
   0x5   :  { %377 = vmatpush.msra.mxu1 %v177_v5  ;;  %355 = vmatpush.msra.mxu0 %v92_v4  ;;  %v82_v12 = vld [vmem:[%s1928_s1 + $0x1e0] sm:$0xff]  ;;  %v167_v13 = vld [vmem:[%s1928_s1 + $0x488] sm:$0xff]  ;;  %v237_v16 = vld [vmem:[%s1928_s1 + $0x6b8] sm:$0xff] }
   0x6   :  { %424 = vmatpush.msra.mxu3 %v332_v7  ;;  %402 = vmatpush.msra.mxu2 %v247_v6  ;;  %v322_v14 = vld [vmem:[%s1928_s1 + $0x960] sm:$0xff]  ;;  %v77_v17 = vld [vmem:[%s1928_s1 + $0x1b8] sm:$0xff]  ;;  %v232_v20 = vld [vmem:[%s1928_s1 + $0x690] sm:$0xff] }
   0x7   :  { %378 = vmatpush.msra.mxu1 %v172_v9  ;;  %356 = vmatpush.msra.mxu0 %v87_v8  ;;  %v162_v15 = vld [vmem:[%s1928_s1 + $0x460] sm:$0xff]  ;;  %v317_v18 = vld [vmem:[%s1928_s1 + $0x938] sm:$0xff]  ;;  %v72_v21 = vld [vmem:[%s1928_s1 + $0x190] sm:$0xff] }
   0x8   :  { %425 = vmatpush.msra.mxu3 %v327_v10  ;;  %403 = vmatpush.msra.mxu2 %v242_v11  ;;  %v157_v19 = vld [vmem:[%s1928_s1 + $0x438] sm:$0xff]  ;;  %v312_v22 = vld [vmem:[%s1928_s1 + $0x910] sm:$0xff]  ;;  %v227_v24 = vld [vmem:[%s1928_s1 + $0x668] sm:$0xff] }
   0x9   :  { %379 = vmatpush.msra.mxu1 %v167_v13  ;;  %357 = vmatpush.msra.mxu0 %v82_v12  ;;  %v152_v23 = vld [vmem:[%s1928_s1 + $0x410] sm:$0xff]  ;;  %v67_v25 = vld [vmem:[%s1928_s1 + $0x168] sm:$0xff]  ;;  %v222_v28 = vld [vmem:[%s1928_s1 + $0x640] sm:$0xff] }
   0xa   :  { %426 = vmatpush.msra.mxu3 %v322_v14  ;;  %404 = vmatpush.msra.mxu2 %v237_v16  ;;  %v307_v26 = vld [vmem:[%s1928_s1 + $0x8e8] sm:$0xff]  ;;  %v62_v29 = vld [vmem:[%s1928_s1 + $0x140] sm:$0xff]  ;;  %v217_v32 = vld [vmem:[%s1928_s1 + $0x618] sm:$0xff] }
   0xb   :  { %380 = vmatpush.msra.mxu1 %v162_v15  ;;  %358 = vmatpush.msra.mxu0 %v77_v17  ;;  %v147_v27 = vld [vmem:[%s1928_s1 + $0x3e8] sm:$0xff]  ;;  %v302_v30 = vld [vmem:[%s1928_s1 + $0x8c0] sm:$0xff]  ;;  %v57_v33 = vld [vmem:[%s1928_s1 + $0x118] sm:$0xff] }
   0xc   :  { %427 = vmatpush.msra.mxu3 %v317_v18  ;;  %405 = vmatpush.msra.mxu2 %v232_v20  ;;  %v142_v31 = vld [vmem:[%s1928_s1 + $0x3c0] sm:$0xff]  ;;  %v297_v34 = vld [vmem:[%s1928_s1 + $0x898] sm:$0xff]  ;;  %v212_v36 = vld [vmem:[%s1928_s1 + $0x5f0] sm:$0xff] }
   0xd   :  { %381 = vmatpush.msra.mxu1 %v157_v19  ;;  %359 = vmatpush.msra.mxu0 %v72_v21  ;;  %v137_v35 = vld [vmem:[%s1928_s1 + $0x398] sm:$0xff]  ;;  %v52_v37 = vld [vmem:[%s1928_s1 + $0xf0] sm:$0xff]  ;;  %v207_v40 = vld [vmem:[%s1928_s1 + $0x5c8] sm:$0xff] }
   0xe   :  { %428 = vmatpush.msra.mxu3 %v312_v22  ;;  %406 = vmatpush.msra.mxu2 %v227_v24  ;;  %v292_v38 = vld [vmem:[%s1928_s1 + $0x870] sm:$0xff]  ;;  %v47_v41 = vld [vmem:[%s1928_s1 + $0xc8] sm:$0xff]  ;;  %v202_v44 = vld [vmem:[%s1928_s1 + $0x5a0] sm:$0xff] }
   0xf   :  { %382 = vmatpush.msra.mxu1 %v152_v23  ;;  %360 = vmatpush.msra.mxu0 %v67_v25  ;;  %v132_v39 = vld [vmem:[%s1928_s1 + $0x370] sm:$0xff]  ;;  %v287_v42 = vld [vmem:[%s1928_s1 + $0x848] sm:$0xff]  ;;  %v42_v45 = vld [vmem:[%s1928_s1 + $0xa0] sm:$0xff] }
  0x10   :  { %429 = vmatpush.msra.mxu3 %v307_v26  ;;  %407 = vmatpush.msra.mxu2 %v222_v28  ;;  %v127_v43 = vld [vmem:[%s1928_s1 + $0x348] sm:$0xff]  ;;  %v282_v46 = vld [vmem:[%s1928_s1 + $0x820] sm:$0xff]  ;;  %v197_v48 = vld [vmem:[%s1928_s1 + $0x578] sm:$0xff] }
  0x11   :  { %383 = vmatpush.msra.mxu1 %v147_v27  ;;  %361 = vmatpush.msra.mxu0 %v62_v29  ;;  %v122_v47 = vld [vmem:[%s1928_s1 + $0x320] sm:$0xff]  ;;  %v37_v49 = vld [vmem:[%s1928_s1 + $0x78] sm:$0xff]  ;;  %v192_v52 = vld [vmem:[%s1928_s1 + $0x550] sm:$0xff] }
  0x12   :  { %430 = vmatpush.msra.mxu3 %v302_v30  ;;  %408 = vmatpush.msra.mxu2 %v217_v32  ;;  %v277_v50 = vld [vmem:[%s1928_s1 + $0x7f8] sm:$0xff]  ;;  %v32_v53 = vld [vmem:[%s1928_s1 + $0x50] sm:$0xff]  ;;  %v187_v56 = vld [vmem:[%s1928_s1 + $0x528] sm:$0xff] }
  0x13   :  { %384 = vmatpush.msra.mxu1 %v142_v31  ;;  %362 = vmatpush.msra.mxu0 %v57_v33  ;;  %v117_v51 = vld [vmem:[%s1928_s1 + $0x2f8] sm:$0xff]  ;;  %v272_v54 = vld [vmem:[%s1928_s1 + $0x7d0] sm:$0xff]  ;;  %v27_v57 = vld [vmem:[%s1928_s1 + $0x28] sm:$0xff] }
  0x14   :  { %431 = vmatpush.msra.mxu3 %v297_v34  ;;  %409 = vmatpush.msra.mxu2 %v212_v36  ;;  %v112_v55 = vld [vmem:[%s1928_s1 + $0x2d0] sm:$0xff]  ;;  %v267_v58 = vld [vmem:[%s1928_s1 + $0x7a8] sm:$0xff]  ;;  %v182_v60 = vld [vmem:[%s1928_s1 + $0x500] sm:$0xff] }
  0x15   :  { %385 = vmatpush.msra.mxu1 %v137_v35  ;;  %363 = vmatpush.msra.mxu0 %v52_v37  ;;  %v107_v59 = vld [vmem:[%s1928_s1 + $0x2a8] sm:$0xff]  ;;  %v22_v61 = vld [vmem:[%s1928_s1] sm:$0xff]  ;;  %v253_v2 = vld [vmem:[%s1928_s1 + $0x738] sm:$0xff] }
  0x16   :  { %432 = vmatpush.msra.mxu3 %v292_v38  ;;  %410 = vmatpush.msra.mxu2 %v207_v40  ;;  %v258_v62 = vld [vmem:[%s1928_s1 + $0x760] sm:$0xff]  ;;  %v93_v4 = vld [vmem:[%s1928_s1 + $0x238] sm:$0xff]  ;;  %v248_v6 = vld [vmem:[%s1928_s1 + $0x710] sm:$0xff] }
  0x17   :  { %386 = vmatpush.msra.mxu1 %v132_v39  ;;  %364 = vmatpush.msra.mxu0 %v47_v41  ;;  %v262_v63 = vld [vmem:[%s1928_s1 + $0x780] sm:$0xff]  ;;  %v333_v7 = vld [vmem:[%s1928_s1 + $0x9b8] sm:$0xff]  ;;  %v88_v8 = vld [vmem:[%s1928_s1 + $0x210] sm:$0xff] }
  0x18   :  { %433 = vmatpush.msra.mxu3 %v287_v42  ;;  %411 = vmatpush.msra.mxu2 %v202_v44  ;;  %v98_v0 = vld [vmem:[%s1928_s1 + $0x260] sm:$0xff]  ;;  %v173_v9 = vld [vmem:[%s1928_s1 + $0x4b8] sm:$0xff]  ;;  %v243_v10 = vld [vmem:[%s1928_s1 + $0x6e8] sm:$0xff] }
  0x19   :  { %387 = vmatpush.msra.mxu1 %v127_v43  ;;  %365 = vmatpush.msra.mxu0 %v42_v45  ;;  %v338_v1 = vld [vmem:[%s1928_s1 + $0x9e0] sm:$0xff]  ;;  %v328_v11 = vld [vmem:[%s1928_s1 + $0x990] sm:$0xff]  ;;  %v83_v12 = vld [vmem:[%s1928_s1 + $0x1e8] sm:$0xff] }
  0x1a   :  { %434 = vmatpush.msra.mxu3 %v282_v46  ;;  %412 = vmatpush.msra.mxu2 %v197_v48  ;;  %v102_v3 = vld [vmem:[%s1928_s1 + $0x280] sm:$0xff]  ;;  %v168_v13 = vld [vmem:[%s1928_s1 + $0x490] sm:$0xff]  ;;  %v323_v15 = vld [vmem:[%s1928_s1 + $0x968] sm:$0xff] }
  0x1b   :  { %388 = vmatpush.msra.mxu1 %v122_v47  ;;  %366 = vmatpush.msra.mxu0 %v37_v49  ;;  %v178_v5 = vld [vmem:[%s1928_s1 + $0x4e0] sm:$0xff]  ;;  %v163_v17 = vld [vmem:[%s1928_s1 + $0x468] sm:$0xff]  ;;  %v233_v18 = vld [vmem:[%s1928_s1 + $0x698] sm:$0xff] }
  0x1c   :  { %435 = vmatpush.msra.mxu3 %v277_v50  ;;  %413 = vmatpush.msra.mxu2 %v192_v52  ;;  %v238_v14 = vld [vmem:[%s1928_s1 + $0x6c0] sm:$0xff]  ;;  %v73_v20 = vld [vmem:[%s1928_s1 + $0x198] sm:$0xff]  ;;  %v228_v22 = vld [vmem:[%s1928_s1 + $0x670] sm:$0xff] }
  0x1d   :  { %389 = vmatpush.msra.mxu1 %v117_v51  ;;  %367 = vmatpush.msra.mxu0 %v32_v53  ;;  %v78_v16 = vld [vmem:[%s1928_s1 + $0x1c0] sm:$0xff]  ;;  %v313_v23 = vld [vmem:[%s1928_s1 + $0x918] sm:$0xff]  ;;  %v68_v24 = vld [vmem:[%s1928_s1 + $0x170] sm:$0xff] }
  0x1e   :  { %436 = vmatpush.msra.mxu3 %v272_v54  ;;  %414 = vmatpush.msra.mxu2 %v187_v56  ;;  %v318_v19 = vld [vmem:[%s1928_s1 + $0x940] sm:$0xff]  ;;  %v153_v25 = vld [vmem:[%s1928_s1 + $0x418] sm:$0xff]  ;;  %v223_v26 = vld [vmem:[%s1928_s1 + $0x648] sm:$0xff] }
  0x1f   :  { %390 = vmatpush.msra.mxu1 %v112_v55  ;;  %368 = vmatpush.msra.mxu0 %v27_v57  ;;  %v158_v21 = vld [vmem:[%s1928_s1 + $0x440] sm:$0xff]  ;;  %v308_v27 = vld [vmem:[%s1928_s1 + $0x8f0] sm:$0xff]  ;;  %v63_v28 = vld [vmem:[%s1928_s1 + $0x148] sm:$0xff] }
  0x20   :  { %437 = vmatpush.msra.mxu3 %v267_v58  ;;  %415 = vmatpush.msra.mxu2 %v182_v60  ;;  %v148_v29 = vld [vmem:[%s1928_s1 + $0x3f0] sm:$0xff]  ;;  %v218_v30 = vld [vmem:[%s1928_s1 + $0x620] sm:$0xff]  ;;  %v303_v31 = vld [vmem:[%s1928_s1 + $0x8c8] sm:$0xff] }
  0x21   :  { %391 = vmatpush.msra.mxu1 %v107_v59  ;;  %369 = vmatpush.msra.mxu0 %v22_v61  ;;  %v58_v32 = vld [vmem:[%s1928_s1 + $0x120] sm:$0xff]  ;;  %v143_v33 = vld [vmem:[%s1928_s1 + $0x3c8] sm:$0xff]  ;;  %v213_v34 = vld [vmem:[%s1928_s1 + $0x5f8] sm:$0xff] }
  0x22   :  { %492 = vmatpush.msrb.mxu2 %v258_v62  ;;  %438 = vmatpush.msra.mxu3 %v262_v63  ;;  %v298_v35 = vld [vmem:[%s1928_s1 + $0x8a0] sm:$0xff]  ;;  %v53_v36 = vld [vmem:[%s1928_s1 + $0xf8] sm:$0xff]  ;;  %v208_v38 = vld [vmem:[%s1928_s1 + $0x5d0] sm:$0xff] }
  0x23   :  { %446 = vmatpush.msrb.mxu0 %v98_v0  ;;  %392 = vmatpush.msra.mxu1 %v102_v3  ;;  %v138_v37 = vld [vmem:[%s1928_s1 + $0x3a0] sm:$0xff]  ;;  %v293_v39 = vld [vmem:[%s1928_s1 + $0x878] sm:$0xff]  ;;  %v48_v40 = vld [vmem:[%s1928_s1 + $0xd0] sm:$0xff] }
  0x24   :  { %515 = vmatpush.msrb.mxu3 %v338_v1  ;;  %493 = vmatpush.msrb.mxu2 %v253_v2  ;;  %v133_v41 = vld [vmem:[%s1928_s1 + $0x378] sm:$0xff]  ;;  %v203_v42 = vld [vmem:[%s1928_s1 + $0x5a8] sm:$0xff]  ;;  %v288_v43 = vld [vmem:[%s1928_s1 + $0x850] sm:$0xff] }
  0x25   :  { %447 = vmatpush.msrb.mxu0 %v93_v4  ;;  %469 = vmatpush.msrb.mxu1 %v178_v5  ;;  %v43_v44 = vld [vmem:[%s1928_s1 + $0xa8] sm:$0xff]  ;;  %v128_v45 = vld [vmem:[%s1928_s1 + $0x350] sm:$0xff]  ;;  %v198_v46 = vld [vmem:[%s1928_s1 + $0x580] sm:$0xff] }
  0x26   :  { %494 = vmatpush.msrb.mxu2 %v248_v6  ;;  %516 = vmatpush.msrb.mxu3 %v333_v7  ;;  %v283_v47 = vld [vmem:[%s1928_s1 + $0x828] sm:$0xff]  ;;  %v38_v48 = vld [vmem:[%s1928_s1 + $0x80] sm:$0xff]  ;;  %v193_v50 = vld [vmem:[%s1928_s1 + $0x558] sm:$0xff] }
  0x27   :  { %448 = vmatpush.msrb.mxu0 %v88_v8  ;;  %470 = vmatpush.msrb.mxu1 %v173_v9  ;;  %v123_v49 = vld [vmem:[%s1928_s1 + $0x328] sm:$0xff]  ;;  %v278_v51 = vld [vmem:[%s1928_s1 + $0x800] sm:$0xff]  ;;  %v33_v52 = vld [vmem:[%s1928_s1 + $0x58] sm:$0xff] }
  0x28   :  { %495 = vmatpush.msrb.mxu2 %v243_v10  ;;  %517 = vmatpush.msrb.mxu3 %v328_v11  ;;  %v118_v53 = vld [vmem:[%s1928_s1 + $0x300] sm:$0xff]  ;;  %v188_v54 = vld [vmem:[%s1928_s1 + $0x530] sm:$0xff]  ;;  %v273_v55 = vld [vmem:[%s1928_s1 + $0x7d8] sm:$0xff] }
  0x29   :  { %449 = vmatpush.msrb.mxu0 %v83_v12  ;;  %471 = vmatpush.msrb.mxu1 %v168_v13  ;;  %v28_v56 = vld [vmem:[%s1928_s1 + $0x30] sm:$0xff]  ;;  %v113_v57 = vld [vmem:[%s1928_s1 + $0x2d8] sm:$0xff]  ;;  %v183_v58 = vld [vmem:[%s1928_s1 + $0x508] sm:$0xff] }
  0x2a   :  { %496 = vmatpush.msrb.mxu2 %v238_v14  ;;  %518 = vmatpush.msrb.mxu3 %v323_v15  ;;  %v268_v59 = vld [vmem:[%s1928_s1 + $0x7b0] sm:$0xff]  ;;  %v23_v61 = vld [vmem:[%s1928_s1 + $0x8] sm:$0xff]  ;;  %v1240_v1 = vld [vmem:[%s1929_s0] sm:$0xff] }
  0x2b   :  { %450 = vmatpush.msrb.mxu0 %v78_v16  ;;  %472 = vmatpush.msrb.mxu1 %v163_v17  ;;  %v1223_v60 = vld [vmem:[%s1929_s0 + $0x10] sm:$0xff]  ;;  %v259_v62 = vld [vmem:[%s1928_s1 + $0x768] sm:$0xff]  ;;  %v1246_v2 = vld [vmem:[%s1929_s0 + $0x18] sm:$0xff] }
  0x2c   :  { %497 = vmatpush.msrb.mxu2 %v233_v18  ;;  %519 = vmatpush.msrb.mxu3 %v318_v19  ;;  %v108_v63 = vld [vmem:[%s1928_s1 + $0x2b0] sm:$0xff]  ;;  %v263_v0 = vld [vmem:[%s1928_s1 + $0x788] sm:$0xff]  ;;  %v254_v4 = vld [vmem:[%s1928_s1 + $0x740] sm:$0xff] }
  0x2d   :  { %451 = vmatpush.msrb.mxu0 %v73_v20  ;;  %473 = vmatpush.msrb.mxu1 %v158_v21  ;;  %v99_v3 = vld [vmem:[%s1928_s1 + $0x268] sm:$0xff]  ;;  %v94_v7 = vld [vmem:[%s1928_s1 + $0x240] sm:$0xff]  ;;  %v249_v9 = vld [vmem:[%s1928_s1 + $0x718] sm:$0xff] }
  0x2e   :  { %498 = vmatpush.msrb.mxu2 %v228_v22  ;;  %520 = vmatpush.msrb.mxu3 %v313_v23  ;;  %v339_v5 = vld [vmem:[%s1928_s1 + $0x9e8] sm:$0xff]  ;;  %v334_v11 = vld [vmem:[%s1928_s1 + $0x9c0] sm:$0xff]  ;;  %v89_v12 = vld [vmem:[%s1928_s1 + $0x218] sm:$0xff] }
  0x2f   :  { %452 = vmatpush.msrb.mxu0 %v68_v24  ;;  %474 = vmatpush.msrb.mxu1 %v153_v25  ;;  %v103_v6 = vld [vmem:[%s1928_s1 + $0x288] sm:$0xff]  ;;  %v244_v13 = vld [vmem:[%s1928_s1 + $0x6f0] sm:$0xff]  ;;  %v174_v14 = vld [vmem:[%s1928_s1 + $0x4c0] sm:$0xff] }
  0x30   :  { %499 = vmatpush.msrb.mxu2 %v223_v26  ;;  %521 = vmatpush.msrb.mxu3 %v308_v27  ;;  %v1268_v8 = vld [vmem:[%s1929_s0 + $0x8] sm:$0xff]  ;;  %v329_v15 = vld [vmem:[%s1928_s1 + $0x998] sm:$0xff]  ;;  %v84_v16 = vld [vmem:[%s1928_s1 + $0x1f0] sm:$0xff] }
  0x31   :  { %453 = vmatpush.msrb.mxu0 %v63_v28  ;;  %475 = vmatpush.msrb.mxu1 %v148_v29  ;;  %v179_v10 = vld [vmem:[%s1928_s1 + $0x4e8] sm:$0xff]  ;;  %v169_v18 = vld [vmem:[%s1928_s1 + $0x498] sm:$0xff]  ;;  %v324_v19 = vld [vmem:[%s1928_s1 + $0x970] sm:$0xff] }
  0x32   :  { %500 = vmatpush.msrb.mxu2 %v218_v30  ;;  %522 = vmatpush.msrb.mxu3 %v303_v31  ;;  %v239_v17 = vld [vmem:[%s1928_s1 + $0x6c8] sm:$0xff]  ;;  %v234_v21 = vld [vmem:[%s1928_s1 + $0x6a0] sm:$0xff]  ;;  %v164_v22 = vld [vmem:[%s1928_s1 + $0x470] sm:$0xff] }
  0x33   :  { %454 = vmatpush.msrb.mxu0 %v58_v32  ;;  %476 = vmatpush.msrb.mxu1 %v143_v33  ;;  %v79_v20 = vld [vmem:[%s1928_s1 + $0x1c8] sm:$0xff]  ;;  %v74_v24 = vld [vmem:[%s1928_s1 + $0x1a0] sm:$0xff]  ;;  %v229_v25 = vld [vmem:[%s1928_s1 + $0x678] sm:$0xff] }
  0x34   :  { %501 = vmatpush.msrb.mxu2 %v213_v34  ;;  %523 = vmatpush.msrb.mxu3 %v298_v35  ;;  %v319_v23 = vld [vmem:[%s1928_s1 + $0x948] sm:$0xff]  ;;  %v314_v27 = vld [vmem:[%s1928_s1 + $0x920] sm:$0xff]  ;;  %v69_v28 = vld [vmem:[%s1928_s1 + $0x178] sm:$0xff] }
  0x35   :  { %455 = vmatpush.msrb.mxu0 %v53_v36  ;;  %477 = vmatpush.msrb.mxu1 %v138_v37  ;;  %v159_v26 = vld [vmem:[%s1928_s1 + $0x448] sm:$0xff]  ;;  %v224_v29 = vld [vmem:[%s1928_s1 + $0x650] sm:$0xff]  ;;  %v154_v30 = vld [vmem:[%s1928_s1 + $0x420] sm:$0xff] }
  0x36   :  { %502 = vmatpush.msrb.mxu2 %v208_v38  ;;  %524 = vmatpush.msrb.mxu3 %v293_v39  ;;  %v309_v31 = vld [vmem:[%s1928_s1 + $0x8f8] sm:$0xff]  ;;  %v64_v32 = vld [vmem:[%s1928_s1 + $0x150] sm:$0xff]  ;;  %v219_v33 = vld [vmem:[%s1928_s1 + $0x628] sm:$0xff] }
  0x37   :  { %456 = vmatpush.msrb.mxu0 %v48_v40  ;;  %478 = vmatpush.msrb.mxu1 %v133_v41  ;;  %v149_v34 = vld [vmem:[%s1928_s1 + $0x3f8] sm:$0xff]  ;;  %v304_v35 = vld [vmem:[%s1928_s1 + $0x8d0] sm:$0xff]  ;;  %v59_v36 = vld [vmem:[%s1928_s1 + $0x128] sm:$0xff] }
  0x38   :  { %503 = vmatpush.msrb.mxu2 %v203_v42  ;;  %525 = vmatpush.msrb.mxu3 %v288_v43  ;;  %v214_v37 = vld [vmem:[%s1928_s1 + $0x600] sm:$0xff]  ;;  %v144_v38 = vld [vmem:[%s1928_s1 + $0x3d0] sm:$0xff]  ;;  %v299_v39 = vld [vmem:[%s1928_s1 + $0x8a8] sm:$0xff] }
  0x39   :  { %457 = vmatpush.msrb.mxu0 %v43_v44  ;;  %479 = vmatpush.msrb.mxu1 %v128_v45  ;;  %v54_v40 = vld [vmem:[%s1928_s1 + $0x100] sm:$0xff]  ;;  %v209_v41 = vld [vmem:[%s1928_s1 + $0x5d8] sm:$0xff]  ;;  %v139_v42 = vld [vmem:[%s1928_s1 + $0x3a8] sm:$0xff] }
  0x3a   :  { %504 = vmatpush.msrb.mxu2 %v198_v46  ;;  %526 = vmatpush.msrb.mxu3 %v283_v47  ;;  %v294_v43 = vld [vmem:[%s1928_s1 + $0x880] sm:$0xff]  ;;  %v49_v44 = vld [vmem:[%s1928_s1 + $0xd8] sm:$0xff]  ;;  %v204_v45 = vld [vmem:[%s1928_s1 + $0x5b0] sm:$0xff] }
  0x3b   :  { %458 = vmatpush.msrb.mxu0 %v38_v48  ;;  %480 = vmatpush.msrb.mxu1 %v123_v49  ;;  %v134_v46 = vld [vmem:[%s1928_s1 + $0x380] sm:$0xff]  ;;  %v289_v47 = vld [vmem:[%s1928_s1 + $0x858] sm:$0xff]  ;;  %v1391_v48 = vld [vmem:[%s1929_s0 + $0x30] sm:$0xff] }
  0x3c   :  { %505 = vmatpush.msrb.mxu2 %v193_v50  ;;  %527 = vmatpush.msrb.mxu3 %v278_v51  ;;  %v44_v49 = vld [vmem:[%s1928_s1 + $0xb0] sm:$0xff]  ;;  %v129_v50 = vld [vmem:[%s1928_s1 + $0x358] sm:$0xff]  ;;  %v199_v51 = vld [vmem:[%s1928_s1 + $0x588] sm:$0xff] }
  0x3d   :  { %459 = vmatpush.msrb.mxu0 %v33_v52  ;;  %481 = vmatpush.msrb.mxu1 %v118_v53  ;;  %v284_v52 = vld [vmem:[%s1928_s1 + $0x830] sm:$0xff]  ;;  %v1408_v53 = vld [vmem:[%s1929_s0 + $0x20] sm:$0xff] }
  0x3e   :  { %506 = vmatpush.msrb.mxu2 %v188_v54  ;;  %528 = vmatpush.msrb.mxu3 %v273_v55  ;;  %v1414_v54 = vld [vmem:[%s1929_s0 + $0x38] sm:$0xff]  ;;  %v39_v55 = vld [vmem:[%s1928_s1 + $0x88] sm:$0xff] }
  0x3f   :  { %460 = vmatpush.msrb.mxu0 %v28_v56  ;;  %482 = vmatpush.msrb.mxu1 %v113_v57  ;;  %v124_v56 = vld [vmem:[%s1928_s1 + $0x330] sm:$0xff]  ;;  %v194_v57 = vld [vmem:[%s1928_s1 + $0x560] sm:$0xff] }
  0x40   :  { %507 = vmatpush.msrb.mxu2 %v183_v58  ;;  %529 = vmatpush.msrb.mxu3 %v268_v59  ;;  %v279_v58 = vld [vmem:[%s1928_s1 + $0x808] sm:$0xff] }
  0x41   :  { %416 = vmatmul.f32.vlgmr.msra.gmra.mxu2 %v1223_v60  ;;  %461 = vmatpush.msrb.mxu0 %v23_v61  ;;  %v1432_v59 = vld [vmem:[%s1929_s0 + $0x28] sm:$0xff]  ;;  %v34_v61 = vld [vmem:[%s1928_s1 + $0x60] sm:$0xff] }
  0x42   :  { %584 = vmatpush.msra.mxu2 %v259_v62  ;;  %483 = vmatpush.msrb.mxu1 %v108_v63  ;;  %v119_v62 = vld [vmem:[%s1928_s1 + $0x308] sm:$0xff]  ;;  %v189_v63 = vld [vmem:[%s1928_s1 + $0x538] sm:$0xff] }
  0x43   :  { %530 = vmatpush.msrb.mxu3 %v263_v0  ;;  %370 = vmatmul.f32.vlgmr.msra.gmra.mxu0 %v1240_v1  ;;  %v274_v0 = vld [vmem:[%s1928_s1 + $0x7e0] sm:$0xff] }
  0x44   :  { %439 = vmatmul.f32.vlgmr.msra.gmra.mxu3 %v1246_v2  ;;  %538 = vmatpush.msra.mxu0 %v99_v3  ;;  %v29_v3 = vld [vmem:[%s1928_s1 + $0x38] sm:$0xff] }
  0x45   :  { %585 = vmatpush.msra.mxu2 %v254_v4  ;;  %607 = vmatpush.msra.mxu3 %v339_v5  ;;  %v114_v4 = vld [vmem:[%s1928_s1 + $0x2e0] sm:$0xff]  ;;  %v184_v5 = vld [vmem:[%s1928_s1 + $0x510] sm:$0xff] }
  0x46   :  { %484 = vmatpush.msrb.mxu1 %v103_v6  ;;  %539 = vmatpush.msra.mxu0 %v94_v7  ;;  %v269_v6 = vld [vmem:[%s1928_s1 + $0x7b8] sm:$0xff]  ;;  %v24_v7 = vld [vmem:[%s1928_s1 + $0x10] sm:$0xff] }
  0x47   :  { %393 = vmatmul.f32.vlgmr.msra.gmra.mxu1 %v1268_v8  ;;  %586 = vmatpush.msra.mxu2 %v249_v9  ;;  %v260_v9 = vld [vmem:[%s1928_s1 + $0x770] sm:$0xff] }
  0x48   :  { %561 = vmatpush.msra.mxu1 %v179_v10  ;;  %608 = vmatpush.msra.mxu3 %v334_v11  ;;  %v109_v10 = vld [vmem:[%s1928_s1 + $0x2b8] sm:$0xff]  ;;  %v264_v11 = vld [vmem:[%s1928_s1 + $0x790] sm:$0xff] }
  0x49   :  { %540 = vmatpush.msra.mxu0 %v89_v12  ;;  %587 = vmatpush.msra.mxu2 %v244_v13  ;;  %v100_v12 = vld [vmem:[%s1928_s1 + $0x270] sm:$0xff]  ;;  %v255_v13 = vld [vmem:[%s1928_s1 + $0x748] sm:$0xff] }
  0x4a   :  { %562 = vmatpush.msra.mxu1 %v174_v14  ;;  %609 = vmatpush.msra.mxu3 %v329_v15  ;;  %v340_v14 = vld [vmem:[%s1928_s1 + $0x9f0] sm:$0xff] }
  0x4b   :  { %541 = vmatpush.msra.mxu0 %v84_v16  ;;  %588 = vmatpush.msra.mxu2 %v239_v17  ;;  %v104_v15 = vld [vmem:[%s1928_s1 + $0x290] sm:$0xff]  ;;  %v95_v16 = vld [vmem:[%s1928_s1 + $0x248] sm:$0xff]  ;;  %v250_v17 = vld [vmem:[%s1928_s1 + $0x720] sm:$0xff] }
  0x4c   :  { %563 = vmatpush.msra.mxu1 %v169_v18  ;;  %610 = vmatpush.msra.mxu3 %v324_v19  ;;  %v180_v18 = vld [vmem:[%s1928_s1 + $0x4f0] sm:$0xff]  ;;  %v335_v19 = vld [vmem:[%s1928_s1 + $0x9c8] sm:$0xff] }
  0x4d   :  { %542 = vmatpush.msra.mxu0 %v79_v20  ;;  %589 = vmatpush.msra.mxu2 %v234_v21  ;;  %v90_v20 = vld [vmem:[%s1928_s1 + $0x220] sm:$0xff]  ;;  %v245_v21 = vld [vmem:[%s1928_s1 + $0x6f8] sm:$0xff] }
  0x4e   :  { %564 = vmatpush.msra.mxu1 %v164_v22  ;;  %611 = vmatpush.msra.mxu3 %v319_v23  ;;  %v175_v22 = vld [vmem:[%s1928_s1 + $0x4c8] sm:$0xff]  ;;  %v330_v23 = vld [vmem:[%s1928_s1 + $0x9a0] sm:$0xff] }
  0x4f   :  { %543 = vmatpush.msra.mxu0 %v74_v24  ;;  %590 = vmatpush.msra.mxu2 %v229_v25  ;;  %v85_v24 = vld [vmem:[%s1928_s1 + $0x1f8] sm:$0xff]  ;;  %v240_v25 = vld [vmem:[%s1928_s1 + $0x6d0] sm:$0xff] }
  0x50   :  { %565 = vmatpush.msra.mxu1 %v159_v26  ;;  %612 = vmatpush.msra.mxu3 %v314_v27  ;;  %v170_v26 = vld [vmem:[%s1928_s1 + $0x4a0] sm:$0xff]  ;;  %v325_v27 = vld [vmem:[%s1928_s1 + $0x978] sm:$0xff] }
  0x51   :  { %544 = vmatpush.msra.mxu0 %v69_v28  ;;  %591 = vmatpush.msra.mxu2 %v224_v29  ;;  %v80_v28 = vld [vmem:[%s1928_s1 + $0x1d0] sm:$0xff]  ;;  %v235_v29 = vld [vmem:[%s1928_s1 + $0x6a8] sm:$0xff] }
  0x52   :  { %566 = vmatpush.msra.mxu1 %v154_v30  ;;  %613 = vmatpush.msra.mxu3 %v309_v31  ;;  %v165_v30 = vld [vmem:[%s1928_s1 + $0x478] sm:$0xff]  ;;  %v320_v31 = vld [vmem:[%s1928_s1 + $0x950] sm:$0xff] }
  0x53   :  { %545 = vmatpush.msra.mxu0 %v64_v32  ;;  %592 = vmatpush.msra.mxu2 %v219_v33  ;;  %v75_v32 = vld [vmem:[%s1928_s1 + $0x1a8] sm:$0xff]  ;;  %v230_v33 = vld [vmem:[%s1928_s1 + $0x680] sm:$0xff] }
  0x54   :  { %567 = vmatpush.msra.mxu1 %v149_v34  ;;  %614 = vmatpush.msra.mxu3 %v304_v35  ;;  %v160_v34 = vld [vmem:[%s1928_s1 + $0x450] sm:$0xff]  ;;  %v315_v35 = vld [vmem:[%s1928_s1 + $0x928] sm:$0xff] }
  0x55   :  { %546 = vmatpush.msra.mxu0 %v59_v36  ;;  %593 = vmatpush.msra.mxu2 %v214_v37  ;;  %v70_v36 = vld [vmem:[%s1928_s1 + $0x180] sm:$0xff]  ;;  %v225_v37 = vld [vmem:[%s1928_s1 + $0x658] sm:$0xff] }
  0x56   :  { %568 = vmatpush.msra.mxu1 %v144_v38  ;;  %615 = vmatpush.msra.mxu3 %v299_v39  ;;  %v155_v38 = vld [vmem:[%s1928_s1 + $0x428] sm:$0xff]  ;;  %v310_v39 = vld [vmem:[%s1928_s1 + $0x900] sm:$0xff] }
  0x57   :  { %547 = vmatpush.msra.mxu0 %v54_v40  ;;  %594 = vmatpush.msra.mxu2 %v209_v41  ;;  %v65_v40 = vld [vmem:[%s1928_s1 + $0x158] sm:$0xff]  ;;  %v220_v41 = vld [vmem:[%s1928_s1 + $0x630] sm:$0xff] }
  0x58   :  { %569 = vmatpush.msra.mxu1 %v139_v42  ;;  %616 = vmatpush.msra.mxu3 %v294_v43  ;;  %v150_v42 = vld [vmem:[%s1928_s1 + $0x400] sm:$0xff]  ;;  %v305_v43 = vld [vmem:[%s1928_s1 + $0x8d8] sm:$0xff] }
  0x59   :  { %548 = vmatpush.msra.mxu0 %v49_v44  ;;  %595 = vmatpush.msra.mxu2 %v204_v45  ;;  %v60_v44 = vld [vmem:[%s1928_s1 + $0x130] sm:$0xff]  ;;  %v215_v45 = vld [vmem:[%s1928_s1 + $0x608] sm:$0xff] }
  0x5a   :  { %570 = vmatpush.msra.mxu1 %v134_v46  ;;  %617 = vmatpush.msra.mxu3 %v289_v47  ;;  %v145_v46 = vld [vmem:[%s1928_s1 + $0x3d8] sm:$0xff]  ;;  %v300_v47 = vld [vmem:[%s1928_s1 + $0x8b0] sm:$0xff] }
  0x5b   :  { %419 = vmatmul.f32.gmra.mxu2 %v1391_v48  ;;  %549 = vmatpush.msra.mxu0 %v44_v49  ;;  %v55_v49 = vld [vmem:[%s1928_s1 + $0x108] sm:$0xff] }
  0x5c   :  { %571 = vmatpush.msra.mxu1 %v129_v50  ;;  %596 = vmatpush.msra.mxu2 %v199_v51  ;;  %v210_v50 = vld [vmem:[%s1928_s1 + $0x5e0] sm:$0xff]  ;;  %v140_v51 = vld [vmem:[%s1928_s1 + $0x3b0] sm:$0xff] }
  0x5d   :  { %618 = vmatpush.msra.mxu3 %v284_v52  ;;  %373 = vmatmul.f32.gmra.mxu0 %v1408_v53  ;;  %v295_v52 = vld [vmem:[%s1928_s1 + $0x888] sm:$0xff] }
  0x5e   :  { %442 = vmatmul.f32.gmra.mxu3 %v1414_v54  ;;  %550 = vmatpush.msra.mxu0 %v39_v55  ;;  %v50_v55 = vld [vmem:[%s1928_s1 + $0xe0] sm:$0xff] }
  0x5f   :  { %572 = vmatpush.msra.mxu1 %v124_v56  ;;  %597 = vmatpush.msra.mxu2 %v194_v57  ;;  %v135_v56 = vld [vmem:[%s1928_s1 + $0x388] sm:$0xff]  ;;  %v205_v57 = vld [vmem:[%s1928_s1 + $0x5b8] sm:$0xff] }
  0x60   :  { %619 = vmatpush.msra.mxu3 %v279_v58  ;;  %396 = vmatmul.f32.gmra.mxu1 %v1432_v59  ;;  %v290_v58 = vld [vmem:[%s1928_s1 + $0x860] sm:$0xff] }
  0x61   :  { %551 = vmatpush.msra.mxu0 %v34_v61  ;;  %573 = vmatpush.msra.mxu1 %v119_v62  ;;  %v45_v61 = vld [vmem:[%s1928_s1 + $0xb8] sm:$0xff]  ;;  %v130_v62 = vld [vmem:[%s1928_s1 + $0x360] sm:$0xff] }
  0x62   :  { %598 = vmatpush.msra.mxu2 %v189_v63  ;;  %620 = vmatpush.msra.mxu3 %v274_v0  ;;  %v200_v63 = vld [vmem:[%s1928_s1 + $0x590] sm:$0xff]  ;;  %v285_v0 = vld [vmem:[%s1928_s1 + $0x838] sm:$0xff] }
  0x63   :  { %552 = vmatpush.msra.mxu0 %v29_v3  ;;  %574 = vmatpush.msra.mxu1 %v114_v4  ;;  %v40_v3 = vld [vmem:[%s1928_s1 + $0x90] sm:$0xff]  ;;  %v125_v4 = vld [vmem:[%s1928_s1 + $0x338] sm:$0xff] }
  0x64   :  { %599 = vmatpush.msra.mxu2 %v184_v5  ;;  %621 = vmatpush.msra.mxu3 %v269_v6  ;;  %v195_v5 = vld [vmem:[%s1928_s1 + $0x568] sm:$0xff]  ;;  %v280_v6 = vld [vmem:[%s1928_s1 + $0x810] sm:$0xff] }
  0x65   :  { %508 = vmatmul.f32.vlgmr.msrb.gmra.mxu2 %v1223_v60  ;;  %553 = vmatpush.msra.mxu0 %v24_v7  ;;  %v35_v7 = vld [vmem:[%s1928_s1 + $0x68] sm:$0xff] }
  0x66   :  { %676 = vmatpush.msrb.mxu2 %v260_v9  ;;  %575 = vmatpush.msra.mxu1 %v109_v10  ;;  %v120_v9 = vld [vmem:[%s1928_s1 + $0x310] sm:$0xff]  ;;  %v190_v10 = vld [vmem:[%s1928_s1 + $0x540] sm:$0xff] }
  0x67   :  { %622 = vmatpush.msra.mxu3 %v264_v11  ;;  %462 = vmatmul.f32.vlgmr.msrb.gmra.mxu0 %v1240_v1  ;;  %v275_v11 = vld [vmem:[%s1928_s1 + $0x7e8] sm:$0xff] }
  0x68   :  { %531 = vmatmul.f32.vlgmr.msrb.gmra.mxu3 %v1246_v2  ;;  %630 = vmatpush.msrb.mxu0 %v100_v12  ;;  %v30_v12 = vld [vmem:[%s1928_s1 + $0x40] sm:$0xff] }
  0x69   :  { %677 = vmatpush.msrb.mxu2 %v255_v13  ;;  %699 = vmatpush.msrb.mxu3 %v340_v14  ;;  %v115_v13 = vld [vmem:[%s1928_s1 + $0x2e8] sm:$0xff]  ;;  %v185_v14 = vld [vmem:[%s1928_s1 + $0x518] sm:$0xff] }
  0x6a   :  { %576 = vmatpush.msra.mxu1 %v104_v15  ;;  %631 = vmatpush.msrb.mxu0 %v95_v16  ;;  %v270_v15 = vld [vmem:[%s1928_s1 + $0x7c0] sm:$0xff]  ;;  %v261_v16 = vld [vmem:[%s1928_s1 + $0x778] sm:$0xff] }
  0x6b   :  { %485 = vmatmul.f32.vlgmr.msrb.gmra.mxu1 %v1268_v8  ;;  %678 = vmatpush.msrb.mxu2 %v250_v17  ;;  %v25_v17 = vld [vmem:[%s1928_s1 + $0x18] sm:$0xff] }
  0x6c   :  { %653 = vmatpush.msrb.mxu1 %v180_v18  ;;  %700 = vmatpush.msrb.mxu3 %v335_v19  ;;  %v110_v18 = vld [vmem:[%s1928_s1 + $0x2c0] sm:$0xff]  ;;  %v265_v19 = vld [vmem:[%s1928_s1 + $0x798] sm:$0xff] }
  0x6d   :  { %632 = vmatpush.msrb.mxu0 %v90_v20  ;;  %679 = vmatpush.msrb.mxu2 %v245_v21  ;;  %v101_v20 = vld [vmem:[%s1928_s1 + $0x278] sm:$0xff]  ;;  %v256_v21 = vld [vmem:[%s1928_s1 + $0x750] sm:$0xff] }
  0x6e   :  { %654 = vmatpush.msrb.mxu1 %v175_v22  ;;  %701 = vmatpush.msrb.mxu3 %v330_v23  ;;  %v341_v22 = vld [vmem:[%s1928_s1 + $0x9f8] sm:$0xff]  ;;  %v96_v23 = vld [vmem:[%s1928_s1 + $0x250] sm:$0xff] }
  0x6f   :  { %633 = vmatpush.msrb.mxu0 %v85_v24  ;;  %680 = vmatpush.msrb.mxu2 %v240_v25  ;;  %v105_v24 = vld [vmem:[%s1928_s1 + $0x298] sm:$0xff]  ;;  %v251_v25 = vld [vmem:[%s1928_s1 + $0x728] sm:$0xff] }
  0x70   :  { %655 = vmatpush.msrb.mxu1 %v170_v26  ;;  %702 = vmatpush.msrb.mxu3 %v325_v27  ;;  %v181_v26 = vld [vmem:[%s1928_s1 + $0x4f8] sm:$0xff]  ;;  %v336_v27 = vld [vmem:[%s1928_s1 + $0x9d0] sm:$0xff] }
  0x71   :  { %634 = vmatpush.msrb.mxu0 %v80_v28  ;;  %681 = vmatpush.msrb.mxu2 %v235_v29  ;;  %v91_v28 = vld [vmem:[%s1928_s1 + $0x228] sm:$0xff]  ;;  %v246_v29 = vld [vmem:[%s1928_s1 + $0x700] sm:$0xff] }
  0x72   :  { %656 = vmatpush.msrb.mxu1 %v165_v30  ;;  %703 = vmatpush.msrb.mxu3 %v320_v31  ;;  %v176_v30 = vld [vmem:[%s1928_s1 + $0x4d0] sm:$0xff]  ;;  %v331_v31 = vld [vmem:[%s1928_s1 + $0x9a8] sm:$0xff] }
  0x73   :  { %635 = vmatpush.msrb.mxu0 %v75_v32  ;;  %682 = vmatpush.msrb.mxu2 %v230_v33  ;;  %v86_v32 = vld [vmem:[%s1928_s1 + $0x200] sm:$0xff]  ;;  %v171_v33 = vld [vmem:[%s1928_s1 + $0x4a8] sm:$0xff] }
  0x74   :  { %657 = vmatpush.msrb.mxu1 %v160_v34  ;;  %704 = vmatpush.msrb.mxu3 %v315_v35  ;;  %v241_v34 = vld [vmem:[%s1928_s1 + $0x6d8] sm:$0xff]  ;;  %v326_v35 = vld [vmem:[%s1928_s1 + $0x980] sm:$0xff] }
  0x75   :  { %636 = vmatpush.msrb.mxu0 %v70_v36  ;;  %683 = vmatpush.msrb.mxu2 %v225_v37  ;;  %v81_v36 = vld [vmem:[%s1928_s1 + $0x1d8] sm:$0xff]  ;;  %v166_v37 = vld [vmem:[%s1928_s1 + $0x480] sm:$0xff] }
  0x76   :  { %658 = vmatpush.msrb.mxu1 %v155_v38  ;;  %705 = vmatpush.msrb.mxu3 %v310_v39  ;;  %v236_v38 = vld [vmem:[%s1928_s1 + $0x6b0] sm:$0xff]  ;;  %v321_v39 = vld [vmem:[%s1928_s1 + $0x958] sm:$0xff] }
  0x77   :  { %637 = vmatpush.msrb.mxu0 %v65_v40  ;;  %684 = vmatpush.msrb.mxu2 %v220_v41  ;;  %v76_v40 = vld [vmem:[%s1928_s1 + $0x1b0] sm:$0xff]  ;;  %v161_v41 = vld [vmem:[%s1928_s1 + $0x458] sm:$0xff] }
  0x78   :  { %659 = vmatpush.msrb.mxu1 %v150_v42  ;;  %706 = vmatpush.msrb.mxu3 %v305_v43  ;;  %v231_v42 = vld [vmem:[%s1928_s1 + $0x688] sm:$0xff]  ;;  %v316_v43 = vld [vmem:[%s1928_s1 + $0x930] sm:$0xff] }
  0x79   :  { %638 = vmatpush.msrb.mxu0 %v60_v44  ;;  %685 = vmatpush.msrb.mxu2 %v215_v45  ;;  %v71_v44 = vld [vmem:[%s1928_s1 + $0x188] sm:$0xff]  ;;  %v156_v45 = vld [vmem:[%s1928_s1 + $0x430] sm:$0xff] }
  0x7a   :  { %660 = vmatpush.msrb.mxu1 %v145_v46  ;;  %707 = vmatpush.msrb.mxu3 %v300_v47  ;;  %v226_v46 = vld [vmem:[%s1928_s1 + $0x660] sm:$0xff]  ;;  %v311_v47 = vld [vmem:[%s1928_s1 + $0x908] sm:$0xff] }
  0x7b   :  { %639 = vmatpush.msrb.mxu0 %v55_v49  ;;  %686 = vmatpush.msrb.mxu2 %v210_v50  ;;  %v66_v49 = vld [vmem:[%s1928_s1 + $0x160] sm:$0xff]  ;;  %v151_v50 = vld [vmem:[%s1928_s1 + $0x408] sm:$0xff] }
  0x7c   :  { %661 = vmatpush.msrb.mxu1 %v140_v51  ;;  %708 = vmatpush.msrb.mxu3 %v295_v52  ;;  %v221_v51 = vld [vmem:[%s1928_s1 + $0x638] sm:$0xff]  ;;  %v306_v52 = vld [vmem:[%s1928_s1 + $0x8e0] sm:$0xff] }
  0x7d   :  { %511 = vmatmul.f32.gmra.mxu2 %v1391_v48  ;;  %640 = vmatpush.msrb.mxu0 %v50_v55  ;;  %v61_v55 = vld [vmem:[%s1928_s1 + $0x138] sm:$0xff] }
  0x7e   :  { %662 = vmatpush.msrb.mxu1 %v135_v56  ;;  %687 = vmatpush.msrb.mxu2 %v205_v57  ;;  %v146_v56 = vld [vmem:[%s1928_s1 + $0x3e0] sm:$0xff]  ;;  %v216_v57 = vld [vmem:[%s1928_s1 + $0x610] sm:$0xff] }
  0x7f   :  { %709 = vmatpush.msrb.mxu3 %v290_v58  ;;  %465 = vmatmul.f32.gmra.mxu0 %v1408_v53  ;;  %v301_v58 = vld [vmem:[%s1928_s1 + $0x8b8] sm:$0xff] }
  0x80   :  { %534 = vmatmul.f32.gmra.mxu3 %v1414_v54  ;;  %641 = vmatpush.msrb.mxu0 %v45_v61  ;;  %v56_v61 = vld [vmem:[%s1928_s1 + $0x110] sm:$0xff] }
  0x81   :  { %663 = vmatpush.msrb.mxu1 %v130_v62  ;;  %688 = vmatpush.msrb.mxu2 %v200_v63  ;;  %v141_v62 = vld [vmem:[%s1928_s1 + $0x3b8] sm:$0xff]  ;;  %v211_v63 = vld [vmem:[%s1928_s1 + $0x5e8] sm:$0xff] }
  0x82   :  { %710 = vmatpush.msrb.mxu3 %v285_v0  ;;  %488 = vmatmul.f32.gmra.mxu1 %v1432_v59  ;;  %v296_v0 = vld [vmem:[%s1928_s1 + $0x890] sm:$0xff] }
  0x83   :  { %642 = vmatpush.msrb.mxu0 %v40_v3  ;;  %664 = vmatpush.msrb.mxu1 %v125_v4  ;;  %v51_v3 = vld [vmem:[%s1928_s1 + $0xe8] sm:$0xff]  ;;  %v136_v4 = vld [vmem:[%s1928_s1 + $0x390] sm:$0xff] }
  0x84   :  { %689 = vmatpush.msrb.mxu2 %v195_v5  ;;  %711 = vmatpush.msrb.mxu3 %v280_v6  ;;  %v206_v5 = vld [vmem:[%s1928_s1 + $0x5c0] sm:$0xff]  ;;  %v291_v6 = vld [vmem:[%s1928_s1 + $0x868] sm:$0xff] }
  0x85   :  { %643 = vmatpush.msrb.mxu0 %v35_v7  ;;  %665 = vmatpush.msrb.mxu1 %v120_v9  ;;  %v46_v7 = vld [vmem:[%s1928_s1 + $0xc0] sm:$0xff]  ;;  %v131_v9 = vld [vmem:[%s1928_s1 + $0x368] sm:$0xff] }
  0x86   :  { %690 = vmatpush.msrb.mxu2 %v190_v10  ;;  %712 = vmatpush.msrb.mxu3 %v275_v11  ;;  %v201_v10 = vld [vmem:[%s1928_s1 + $0x598] sm:$0xff]  ;;  %v286_v11 = vld [vmem:[%s1928_s1 + $0x840] sm:$0xff] }
  0x87   :  { %600 = vmatmul.f32.vlgmr.msra.gmra.mxu2 %v1223_v60  ;;  %644 = vmatpush.msrb.mxu0 %v30_v12  ;;  %v41_v12 = vld [vmem:[%s1928_s1 + $0x98] sm:$0xff] }
  0x88   :  { %666 = vmatpush.msrb.mxu1 %v115_v13  ;;  %691 = vmatpush.msrb.mxu2 %v185_v14  ;;  %v126_v13 = vld [vmem:[%s1928_s1 + $0x340] sm:$0xff]  ;;  %v196_v14 = vld [vmem:[%s1928_s1 + $0x570] sm:$0xff] }
  0x89   :  { %713 = vmatpush.msrb.mxu3 %v270_v15  ;;  %554 = vmatmul.f32.vlgmr.msra.gmra.mxu0 %v1240_v1  ;;  %v281_v15 = vld [vmem:[%s1928_s1 + $0x818] sm:$0xff] }
  0x8a   :  { %768 = vmatpush.msra.mxu2 %v261_v16  ;;  %623 = vmatmul.f32.vlgmr.msra.gmra.mxu3 %v1246_v2  ;;  %v36_v16 = vld [vmem:[%s1928_s1 + $0x70] sm:$0xff] }
  0x8b   :  { %645 = vmatpush.msrb.mxu0 %v25_v17  ;;  %667 = vmatpush.msrb.mxu1 %v110_v18  ;;  %v121_v17 = vld [vmem:[%s1928_s1 + $0x318] sm:$0xff]  ;;  %v191_v18 = vld [vmem:[%s1928_s1 + $0x548] sm:$0xff] }
  0x8c   :  { %714 = vmatpush.msrb.mxu3 %v265_v19  ;;  %769 = vmatpush.msra.mxu2 %v256_v21  ;;  %v276_v19 = vld [vmem:[%s1928_s1 + $0x7f0] sm:$0xff] }
  0x8d   :  { %722 = vmatpush.msra.mxu0 %v101_v20  ;;  %577 = vmatmul.f32.vlgmr.msra.gmra.mxu1 %v1268_v8  ;;  %v31_v20 = vld [vmem:[%s1928_s1 + $0x48] sm:$0xff]  ;;  %v116_v21 = vld [vmem:[%s1928_s1 + $0x2f0] sm:$0xff] }
  0x8e   :  { %791 = vmatpush.msra.mxu3 %v341_v22  ;;  %668 = vmatpush.msrb.mxu1 %v105_v24  ;;  %v186_v22 = vld [vmem:[%s1928_s1 + $0x520] sm:$0xff] }
  0x8f   :  { %723 = vmatpush.msra.mxu0 %v96_v23  ;;  %770 = vmatpush.msra.mxu2 %v251_v25  ;;  %v271_v23 = vld [vmem:[%s1928_s1 + $0x7c8] sm:$0xff]  ;;  %v26_v24 = vld [vmem:[%s1928_s1 + $0x20] sm:$0xff] }
  0x90   :  { %745 = vmatpush.msra.mxu1 %v181_v26  ;;  %792 = vmatpush.msra.mxu3 %v336_v27  ;;  %v111_v25 = vld [vmem:[%s1928_s1 + $0x2c8] sm:$0xff]  ;;  %v266_v26 = vld [vmem:[%s1928_s1 + $0x7a0] sm:$0xff] }
  0x91   :  { %724 = vmatpush.msra.mxu0 %v91_v28  ;;  %771 = vmatpush.msra.mxu2 %v246_v29  ;;  %v106_v27 = vld [vmem:[%s1928_s1 + $0x2a0] sm:$0xff] }
  0x92   :  { %746 = vmatpush.msra.mxu1 %v176_v30  ;;  %793 = vmatpush.msra.mxu3 %v331_v31 }
  0x93   :  { %603 = vmatmul.f32.gmra.mxu2 %v1391_v48  ;;  %725 = vmatpush.msra.mxu0 %v86_v32 }
  0x94   :  { %747 = vmatpush.msra.mxu1 %v171_v33  ;;  %772 = vmatpush.msra.mxu2 %v241_v34 }
  0x95   :  { %794 = vmatpush.msra.mxu3 %v326_v35  ;;  %557 = vmatmul.f32.gmra.mxu0 %v1408_v53 }
  0x96   :  { %626 = vmatmul.f32.gmra.mxu3 %v1414_v54  ;;  %726 = vmatpush.msra.mxu0 %v81_v36 }
  0x97   :  { %748 = vmatpush.msra.mxu1 %v166_v37  ;;  %773 = vmatpush.msra.mxu2 %v236_v38 }
  0x98   :  { %795 = vmatpush.msra.mxu3 %v321_v39  ;;  %580 = vmatmul.f32.gmra.mxu1 %v1432_v59 }
  0x99   :  { %727 = vmatpush.msra.mxu0 %v76_v40  ;;  %749 = vmatpush.msra.mxu1 %v161_v41 }
  0x9a   :  { %774 = vmatpush.msra.mxu2 %v231_v42  ;;  %796 = vmatpush.msra.mxu3 %v316_v43 }
  0x9b   :  { %728 = vmatpush.msra.mxu0 %v71_v44  ;;  %750 = vmatpush.msra.mxu1 %v156_v45 }
  0x9c   :  { %775 = vmatpush.msra.mxu2 %v226_v46  ;;  %797 = vmatpush.msra.mxu3 %v311_v47 }
  0x9d   :  { %692 = vmatmul.f32.vlgmr.msrb.gmra.mxu2 %v1223_v60  ;;  %729 = vmatpush.msra.mxu0 %v66_v49 }
  0x9e   :  { %751 = vmatpush.msra.mxu1 %v151_v50  ;;  %776 = vmatpush.msra.mxu2 %v221_v51 }
  0x9f   :  { %798 = vmatpush.msra.mxu3 %v306_v52  ;;  %646 = vmatmul.f32.vlgmr.msrb.gmra.mxu0 %v1240_v1 }
  0xa0   :  { %715 = vmatmul.f32.vlgmr.msrb.gmra.mxu3 %v1246_v2  ;;  %730 = vmatpush.msra.mxu0 %v61_v55 }
  0xa1   :  { %752 = vmatpush.msra.mxu1 %v146_v56  ;;  %777 = vmatpush.msra.mxu2 %v216_v57 }
  0xa2   :  { %799 = vmatpush.msra.mxu3 %v301_v58  ;;  %669 = vmatmul.f32.vlgmr.msrb.gmra.mxu1 %v1268_v8 }
  0xa3   :  { %731 = vmatpush.msra.mxu0 %v56_v61  ;;  %753 = vmatpush.msra.mxu1 %v141_v62 }
  0xa4   :  { %778 = vmatpush.msra.mxu2 %v211_v63  ;;  %800 = vmatpush.msra.mxu3 %v296_v0 }
  0xa5   :  { %732 = vmatpush.msra.mxu0 %v51_v3  ;;  %754 = vmatpush.msra.mxu1 %v136_v4 }
  0xa6   :  { %779 = vmatpush.msra.mxu2 %v206_v5  ;;  %801 = vmatpush.msra.mxu3 %v291_v6 }
  0xa7   :  { %695 = vmatmul.f32.gmra.mxu2 %v1391_v48  ;;  %733 = vmatpush.msra.mxu0 %v46_v7 }
  0xa8   :  { %755 = vmatpush.msra.mxu1 %v131_v9  ;;  %780 = vmatpush.msra.mxu2 %v201_v10 }
  0xa9   :  { %802 = vmatpush.msra.mxu3 %v286_v11  ;;  %649 = vmatmul.f32.gmra.mxu0 %v1408_v53 }
  0xaa   :  { %718 = vmatmul.f32.gmra.mxu3 %v1414_v54  ;;  %734 = vmatpush.msra.mxu0 %v41_v12 }
  0xab   :  { %756 = vmatpush.msra.mxu1 %v126_v13  ;;  %781 = vmatpush.msra.mxu2 %v196_v14 }
  0xac   :  { %803 = vmatpush.msra.mxu3 %v281_v15  ;;  %672 = vmatmul.f32.gmra.mxu1 %v1432_v59 }
  0xad   :  { %735 = vmatpush.msra.mxu0 %v36_v16  ;;  %757 = vmatpush.msra.mxu1 %v121_v17 }
  0xae   :  { %782 = vmatpush.msra.mxu2 %v191_v18  ;;  %804 = vmatpush.msra.mxu3 %v276_v19 }
  0xaf   :  { %736 = vmatpush.msra.mxu0 %v31_v20  ;;  %758 = vmatpush.msra.mxu1 %v116_v21 }
  0xb0   :  { %783 = vmatpush.msra.mxu2 %v186_v22  ;;  %805 = vmatpush.msra.mxu3 %v271_v23 }
  0xb1   :  { %784 = vmatmul.f32.vlgmr.msra.gmra.mxu2 %v1223_v60  ;;  %737 = vmatpush.msra.mxu0 %v26_v24  ;;  %v1888_v60 = vld [vmem:[%s1930_s2] sm:$0x1f] }
  0xb2   :  { %759 = vmatpush.msra.mxu1 %v111_v25  ;;  %806 = vmatpush.msra.mxu3 %v266_v26  ;;  %v345_v37 = vperm.slane %v1888_v60, 1  ;;  %v346_v58 = vperm.slane %v1888_v60, 2  ;;  %v347_v15 = vperm.slane %v1888_v60, 3 }
  0xb3   :  { %738 = vmatmul.f32.vlgmr.msra.gmra.mxu0 %v1240_v1  ;;  %807 = vmatmul.f32.vlgmr.msra.gmra.mxu3 %v1246_v2  ;;  %v344_v1 = vperm.slane %v1888_v60, 0 }
  0xb4   :  { %760 = vmatpush.msra.mxu1 %v106_v27 }
  0xb5   :  { %761 = vmatmul.f32.vlgmr.msra.gmra.mxu1 %v1268_v8 }
  0xb9   :  { %787 = vmatmul.f32.gmra.mxu2 %v1391_v48 }
  0xbb   :  { %741 = vmatmul.f32.gmra.mxu0 %v1408_v53  ;;  %810 = vmatmul.f32.gmra.mxu3 %v1414_v54 }
  0xbd   :  { %764 = vmatmul.f32.gmra.mxu1 %v1432_v59 }
  0xc0   :  { %v371_v28 = vpop.f32.mrf.mxu0 }
  0xc1   :  { %v372_v2 = vadd.f32 %v371_v28, %v344_v1 }
  0xc4   :  { %v394_v29 = vpop.f32.mrf.mxu1  ;;  %v417_v30 = vpop.f32.mrf.mxu2 }
  0xc5   :  { %v395_v8 = vadd.f32 %v394_v29, %v372_v2 }
  0xc7   :  { %v418_v31 = vadd.f32 %v417_v30, %v395_v8  ;;  %v440_v48 = vpop.f32.mrf.mxu3  ;;  %v348_v30 = vperm.slane %v1888_v60, 4 }
  0xc9   :  { %v441_v32 = vadd.f32 %v440_v48, %v418_v31 }
  0xcb   :  { %814 = vst [vmem:[%s1931_s3] sm:$0xff] %v441_v32 }
  0xda   :  { %v374_v33 = vpop.f32.mrf.mxu0 }
  0xdb   :  { %v375_v53 = vadd.f32 %v374_v33, %v344_v1 }
  0xdd   :  { %v397_v34 = vpop.f32.mrf.mxu1 }
  0xde   :  { %v398_v54 = vadd.f32 %v397_v34, %v375_v53  ;;  %v420_v35 = vpop.f32.mrf.mxu2 }
  0xe0   :  { %v421_v59 = vadd.f32 %v420_v35, %v398_v54 }
  0xe1   :  { %v443_v36 = vpop.f32.mrf.mxu3 }
  0xe2   :  { %v444_v38 = vadd.f32 %v443_v36, %v421_v59 }
  0xe4   :  { %819 = vst [vmem:[%s1931_s3 + $0x28] sm:$0xff] %v444_v38  ;;  %v463_v39 = vpop.f32.mrf.mxu0 }
  0xe5   :  { %v464_v40 = vadd.f32 %v463_v39, %v345_v37 }
  0xe8   :  { %v486_v41 = vpop.f32.mrf.mxu1  ;;  %v509_v42 = vpop.f32.mrf.mxu2 }
  0xe9   :  { %v487_v43 = vadd.f32 %v486_v41, %v464_v40 }
  0xeb   :  { %v510_v44 = vadd.f32 %v509_v42, %v487_v43  ;;  %v532_v45 = vpop.f32.mrf.mxu3 }
  0xed   :  { %v533_v46 = vadd.f32 %v532_v45, %v510_v44 }
  0xef   :  { %815 = vst [vmem:[%s1931_s3 + $0x8] sm:$0xff] %v533_v46 }
  0xfc   :  { %v466_v47 = vpop.f32.mrf.mxu0 }
  0xfd   :  { %v467_v49 = vadd.f32 %v466_v47, %v345_v37 }
  0xff   :  { %v489_v50 = vpop.f32.mrf.mxu1 }
 0x100   :  { %v490_v51 = vadd.f32 %v489_v50, %v467_v49  ;;  %v512_v52 = vpop.f32.mrf.mxu2 }
 0x102   :  { %v513_v55 = vadd.f32 %v512_v52, %v490_v51 }
 0x103   :  { %v535_v56 = vpop.f32.mrf.mxu3 }
 0x104   :  { %v536_v57 = vadd.f32 %v535_v56, %v513_v55 }
 0x106   :  { %820 = vst [vmem:[%s1931_s3 + $0x30] sm:$0xff] %v536_v57  ;;  %v555_v61 = vpop.f32.mrf.mxu0 }
 0x107   :  { %v556_v62 = vadd.f32 %v555_v61, %v346_v58 }
 0x10a   :  { %v578_v63 = vpop.f32.mrf.mxu1  ;;  %v601_v0 = vpop.f32.mrf.mxu2 }
 0x10b   :  { %v579_v3 = vadd.f32 %v578_v63, %v556_v62 }
 0x10d   :  { %v624_v4 = vpop.f32.mrf.mxu3  ;;  %v602_v5 = vadd.f32 %v601_v0, %v579_v3 }
 0x10f   :  { %v625_v6 = vadd.f32 %v624_v4, %v602_v5 }
 0x111   :  { %816 = vst [vmem:[%s1931_s3 + $0x10] sm:$0xff] %v625_v6 }
 0x112   :  { %v558_v7 = vpop.f32.mrf.mxu0 }
 0x113   :  { %v559_v9 = vadd.f32 %v558_v7, %v346_v58 }
 0x115   :  { %v581_v10 = vpop.f32.mrf.mxu1 }
 0x116   :  { %v582_v11 = vadd.f32 %v581_v10, %v559_v9  ;;  %v604_v12 = vpop.f32.mrf.mxu2 }
 0x118   :  { %v605_v13 = vadd.f32 %v604_v12, %v582_v11 }
 0x119   :  { %v627_v14 = vpop.f32.mrf.mxu3 }
 0x11a   :  { %v628_v16 = vadd.f32 %v627_v14, %v605_v13 }
 0x11c   :  { %821 = vst [vmem:[%s1931_s3 + $0x38] sm:$0xff] %v628_v16  ;;  %v647_v17 = vpop.f32.mrf.mxu0 }
 0x11d   :  { %v648_v18 = vadd.f32 %v647_v17, %v347_v15 }
 0x11f   :  { %v670_v19 = vpop.f32.mrf.mxu1 }
 0x120   :  { %v671_v20 = vadd.f32 %v670_v19, %v648_v18  ;;  %v693_v21 = vpop.f32.mrf.mxu2 }
 0x122   :  { %v694_v22 = vadd.f32 %v693_v21, %v671_v20 }
 0x123   :  { %v716_v23 = vpop.f32.mrf.mxu3 }
 0x124   :  { %v717_v24 = vadd.f32 %v716_v23, %v694_v22 }
 0x126   :  { %817 = vst [vmem:[%s1931_s3 + $0x18] sm:$0xff] %v717_v24  ;;  %v650_v25 = vpop.f32.mrf.mxu0 }
 0x127   :  { %v651_v26 = vadd.f32 %v650_v25, %v347_v15 }
 0x129   :  { %v673_v27 = vpop.f32.mrf.mxu1 }
 0x12a   :  { %v674_v1 = vadd.f32 %v673_v27, %v651_v26  ;;  %v696_v28 = vpop.f32.mrf.mxu2 }
 0x12c   :  { %v697_v2 = vadd.f32 %v696_v28, %v674_v1 }
 0x12d   :  { %v719_v29 = vpop.f32.mrf.mxu3 }
 0x12e   :  { %v720_v8 = vadd.f32 %v719_v29, %v697_v2 }
 0x130   :  { %822 = vst [vmem:[%s1931_s3 + $0x40] sm:$0xff] %v720_v8  ;;  %v739_v31 = vpop.f32.mrf.mxu0 }
 0x131   :  { %v740_v48 = vadd.f32 %v739_v31, %v348_v30 }
 0x132   :  { %v762_v32 = vpop.f32.mrf.mxu1 }
 0x133   :  { %v763_v33 = vadd.f32 %v762_v32, %v740_v48 }
 0x134   :  { %v785_v53 = vpop.f32.mrf.mxu2 }
 0x135   :  { %v786_v34 = vadd.f32 %v785_v53, %v763_v33 }
 0x136   :  { %v808_v54 = vpop.f32.mrf.mxu3 }
 0x137   :  { %v809_v35 = vadd.f32 %v808_v54, %v786_v34 }
 0x138   :  { %v742_v59 = vpop.f32.mrf.mxu0 }
 0x139   :  { %818 = vst [vmem:[%s1931_s3 + $0x20] sm:$0xff] %v809_v35  ;;  %v743_v36 = vadd.f32 %v742_v59, %v348_v30 }
 0x13a   :  { %v765_v60 = vpop.f32.mrf.mxu1 }
 0x13b   :  { %v766_v37 = vadd.f32 %v765_v60, %v743_v36 }
 0x13c   :  { %v788_v38 = vpop.f32.mrf.mxu2 }
 0x13d   :  { %v789_v39 = vadd.f32 %v788_v38, %v766_v37 }
 0x13e   :  { %v811_v40 = vpop.f32.mrf.mxu3 }
 0x13f   :  { %v812_v41 = vadd.f32 %v811_v40, %v789_v39 }
 0x141   :  { %823 = vst [vmem:[%s1931_s3 + $0x48] sm:$0xff] %v812_v41 }

</bundles_post_ra>
